<compile_context>
chip_gen: v7x
topology: tpu7x:2x2x1
jax: 0.10.0
libtpu: 0.0.40
codegen_flags: <defaults>
</compile_context>

<pallas_src>
import jax
import jax.numpy as jnp
from jax.experimental import pallas as pl
from jax.experimental.pallas import tpu as pltpu


def _vdrop_kernel(x_ref, m_ref, o_ref):
    # x_ref: (tt, tn) tile of the flattened (T, B*H) input.
    # m_ref: (1, tn) tile of the pre-scaled mask (0 or 1/keep_prob).
    o_ref[...] = (x_ref[...] * m_ref[...]).astype(o_ref.dtype)


def _locked_mask(seed, n, keep_prob, dtype):
    """Pre-scaled (1, n) dropout mask: 1/keep_prob where kept, 0 elsewhere."""
    key = jax.random.PRNGKey(seed)
    keep = jax.random.bernoulli(key, keep_prob, (1, n))
    return keep.astype(dtype) * jnp.asarray(1.0 / keep_prob, dtype)


def _cdiv(a, b):
    return (a + b - 1) // b


def _tpu_config():
    """Return (vmem_capacity_bytes, generation) with conservative fallbacks."""
    gen = 6
    try:
        kind = jax.devices()[0].device_kind.lower()
        if "v7" in kind:
            gen = 7
        elif "v6" in kind:
            gen = 6
        elif "v5" in kind and ("lite" in kind or "5e" in kind):
            gen = 5
        elif "v5" in kind:
            gen = 6  # v5p: 128 MiB VMEM class
        elif "v4" in kind:
            gen = 6
        elif "v3" in kind or "v2" in kind:
            gen = 5
    except Exception:
        pass
    try:
        vmem_cap = int(pltpu.get_tpu_info().vmem_capacity_bytes)
    except Exception:
        vmem_cap = (64 << 20) if gen >= 7 else (128 << 20)
    return vmem_cap, gen


def _pick_tn(n, max_tn):
    """Lane-tile width: full n if it fits, else a 128-multiple (ideally dividing n)."""
    if n <= max_tn:
        return n
    cap128 = max(128, (max_tn // 128) * 128)
    # Prefer a multiple of 128 that divides n evenly -> no ragged last column
    # block, every store stays on the unmasked lane-dense path.
    for cand in range(cap128, 127, -128):
        if n % cand == 0:
            return cand
    return cap128


def _choose_tiles(T, n, itemsize, target_bytes, min_blocks):
    """Pick (tt, tn) so each block is ~target_bytes and layout-legal."""
    row_align = max(8, 32 // itemsize)  # 8 for f32, 16 for bf16, 32 for int8
    # Lane (last) dim: widest width such that a row_align-row block stays
    # within target_bytes (this is the fix for the old 8x-target blow-up).
    max_tn = max(128, target_bytes // (row_align * itemsize))
    tn = _pick_tn(n, max_tn)
    # Row (time) dim: fill ~target_bytes per block, multiple of row_align
    # (or the full T).
    rows = max(1, target_bytes // (tn * itemsize))
    if rows >= T or T <= row_align:
        tt = T
    else:
        tt = min(T, max(row_align, (rows // row_align) * row_align))
    # Guarantee a shardable grid (v7x has 2 TensorCores); only split when a
    # layout-legal split exists.
    if min_blocks > 1 and _cdiv(T, tt) * _cdiv(n, tn) < min_blocks:
        if tt == T and T >= 2 * row_align:
            tt = max(row_align, _cdiv(_cdiv(T, 2), row_align) * row_align)
        if _cdiv(T, tt) * _cdiv(n, tn) < min_blocks and tn == n and n >= 256:
            tn = max(128, ((n // 2) // 128) * 128)
    return tt, tn


def variational_dropout(x, seed, dropout, *, training=True):
    """x: (T, B, H), time-major (batch_first=False). Same mask at every t."""
    if (not training) or dropout <= 0.0:
        return x
    if dropout >= 1.0:
        # keep_prob == 0 would give a 0/0 -> NaN result (as in PyTorch); guard.
        raise ValueError("dropout must be < 1.0 (keep_prob would be 0).")

    T, B, H = x.shape
    keep_prob = 1.0 - float(dropout)
    n = B * H
    itemsize = x.dtype.itemsize

    vmem_cap, gen = _tpu_config()
    # Generation-aware block target: big enough to hide the ~0.35 us per-step
    # overhead at each generation's HBM bandwidth, small enough that four
    # double-buffered blocks fit VMEM with headroom.
    target_bytes = {5: 4 << 20, 6: 8 << 20, 7: 10 << 20}.get(gen, 8 << 20)
    target_bytes = min(target_bytes, max(1 << 20, vmem_cap // 8))
    min_blocks = 2 if gen >= 7 else 1

    # bf16 mask on bf16 inputs (v6e/v7x): no in-kernel casts. v5e keeps f32.
    mask_dtype = x.dtype if (x.dtype == jnp.bfloat16 and gen >= 6) else jnp.float32

    x2 = x.reshape(T, n)                                  # lane-dense last dim
    mask = _locked_mask(seed, n, keep_prob, mask_dtype)   # (1, n), pre-scaled

    tt, tn = _choose_tiles(T, n, itemsize, target_bytes, min_blocks)
    num_t, num_n = _cdiv(T, tt), _cdiv(n, tn)

    # VMEM budget: double-buffered in + out blocks plus the mask tile.
    block_bytes = tt * tn * itemsize
    mask_block_bytes = tn * jnp.dtype(mask_dtype).itemsize
    vmem_need = 2 * (2 * block_bytes) + 2 * mask_block_bytes
    headroom = max(4 << 20, vmem_cap // 8)
    vmem_limit = min(vmem_cap - headroom,
                     max(32 << 20, vmem_need + vmem_need // 2 + (2 << 20)))
    vmem_limit = max(vmem_limit, min(vmem_need + (1 << 20), vmem_cap - (1 << 20)))

    cost = pl.CostEstimate(
        flops=T * n,
        transcendentals=0,
        bytes_accessed=2 * T * n * itemsize + n * jnp.dtype(mask_dtype).itemsize,
    )

    # Grid order (n-tiles, T-tiles): innermost axis keeps the mask block index
    # (0, j) constant, so the mask stays resident instead of re-DMAing per step.
    out2 = pl.pallas_call(
        _vdrop_kernel,
        out_shape=jax.ShapeDtypeStruct((T, n), x.dtype),
        grid_spec=pl.GridSpec(
            grid=(num_n, num_t),
            in_specs=[
                pl.BlockSpec((tt, tn), lambda j, i: (i, j)),
                pl.BlockSpec((1, tn), lambda j, i: (0, j)),
            ],
            out_specs=pl.BlockSpec((tt, tn), lambda j, i: (i, j)),
        ),
        compiler_params=pltpu.CompilerParams(
            dimension_semantics=("parallel", "parallel"),
            vmem_limit_bytes=int(vmem_limit),
        ),
        cost_estimate=cost,
    )(x2, mask)
    return out2.reshape(T, B, H)


# TODO(synk): PackedSequence inputs have no Pallas equivalent; only dense
# (T, B, H) tensors (batch_first=False) are handled here.
# TODO(synk): batch_first=True branch (mask shape (B, 1, H)) is not wired up;
# the module's default (batch_first=False) path is implemented.


if __name__ == "__main__":
    T, B, H = 8, 2, 32
    dropout = 0.25
    seed = 1234

    key = jax.random.PRNGKey(0)
    x = jax.random.normal(key, (T, B, H), dtype=jnp.float32)

    out = variational_dropout(x, seed=seed, dropout=dropout, training=True)
    out = jax.block_until_ready(out)

    # Exact reference: mask generation is deterministic given the seed.
    keep_prob = 1.0 - dropout
    mask = _locked_mask(seed, B * H, keep_prob, jnp.float32).reshape(1, B, H)
    expected = x * mask
    assert out.shape == x.shape
    assert bool(jnp.allclose(out, expected, rtol=1e-6, atol=1e-6)), "value mismatch"

    # Same mask applied at every time step.
    zero_pattern = (out == 0.0)
    assert bool(jnp.all(zero_pattern == zero_pattern[0:1])), "mask differs across time"

    # Eval / zero-dropout path returns the input unchanged.
    out_eval = variational_dropout(x, seed=seed, dropout=dropout, training=False)
    assert out_eval is x

    print("KERNEL_OK")
</pallas_src>

<mosaic_0001>
module attributes {stable_mosaic.version = 11 : i64} {
  func.func @_vdrop_kernel(%arg0: i32, %arg1: i32, %arg2: memref<8x64xf32, #tpu.memory_space<vmem>>, %arg3: memref<1x64xf32, #tpu.memory_space<vmem>>, %arg4: memref<8x64xf32, #tpu.memory_space<vmem>>) attributes {dimension_semantics = [#tpu.dimension_semantics<parallel>, #tpu.dimension_semantics<parallel>], iteration_bounds = array<i64: 1, 1>, scalar_prefetch = 0 : i64, scratch_operands = 0 : i64, tpu.core_type = #tpu.core_type<tc>, window_params = [{transform_indices = @transform_0, window_bounds = array<i64: 8, 64>}, {transform_indices = @transform_1, window_bounds = array<i64: 1, 64>}, {transform_indices = @transform_2, window_bounds = array<i64: 8, 64>}]} {
    %c0 = arith.constant 0 : index
    %c0_0 = arith.constant 0 : index
    %0 = vector.load %arg2[%c0, %c0_0] : memref<8x64xf32, #tpu.memory_space<vmem>>, vector<8x64xf32>
    %c0_1 = arith.constant 0 : index
    %c0_2 = arith.constant 0 : index
    %1 = vector.load %arg3[%c0_1, %c0_2] : memref<1x64xf32, #tpu.memory_space<vmem>>, vector<1x64xf32>
    %2 = vector.broadcast %1 : vector<1x64xf32> to vector<8x64xf32>
    %3 = arith.mulf %0, %2 : vector<8x64xf32>
    %c0_3 = arith.constant 0 : index
    %c0_4 = arith.constant 0 : index
    %4 = vector.load %arg4[%c0_3, %c0_4] : memref<8x64xf32, #tpu.memory_space<vmem>>, vector<8x64xf32>
    tpu.vector_store %arg4[%c0_3, %c0_4], %3 {strides = array<i32>} : memref<8x64xf32, #tpu.memory_space<vmem>>, vector<8x64xf32>,
    return
  }
  func.func @transform_0(%arg0: i32, %arg1: i32) -> (i32, i32) {
    %c0_i32 = arith.constant 0 : i32
    return %arg1, %arg0 : i32, i32
  }
  func.func @transform_1(%arg0: i32, %arg1: i32) -> (i32, i32) {
    %c0_i32 = arith.constant 0 : i32
    %c0_i32_0 = arith.constant 0 : i32
    return %c0_i32, %arg0 : i32, i32
  }
  func.func @transform_2(%arg0: i32, %arg1: i32) -> (i32, i32) {
    %c0_i32 = arith.constant 0 : i32
    return %arg1, %arg0 : i32, i32
  }
}

</mosaic_0001>

<bundles_post_ra>
// kernel: tpu_custom_call.1
= control target key start
LH: loop header
LB: loop body
LE: loop exit
PB: predicated region body
PF: predicated region fallthrough
CT: control target
= control target key end

     0   :  { %7 = vsyncpa [#allocation3], 0  ;;  %s145_s0 = inlined_call_operand.hbm [shape: f32[8,64], index: 0, kind: input, shape index: {}]   ;;  %s146_s1 = inlined_call_operand.vmem [shape: f32[1,64], index: 1, kind: input, shape index: {}]   ;;  %s147_s2 = inlined_call_operand.hbm [shape: f32[8,64], index: 2, kind: output, shape index: {}]  }
   0x1   :  { %8 = vsyncpa [#allocation4], 0  ;;  %s101_s9 = smov [#allocation2]   ;;  %s53_s13 = scalar_lea.hbm %s145_s0, 128 }
   0x2   :  { %s15_s10 = sshll.u32 %s101_s9, 4  ;;  %p54_p0 = scmp.ne.s32.totalorder %s145_s0, %s53_s13  ;;  %s16_s10 = int_to_ptr.vmem [resolvable:$true] %s15_s10 }
   0x3   :  { %p57_p1 = scmp.lt.u32.totalorder %s53_s13, %s145_s0 }
   0x5   :  { %p59_p2 = pnand %p57_p1, %p54_p0 }
   0x7   :  { %62 = shalt.err (!%p59_p2)
}
   0x8   :  { %s63_s18 = scalar_lea.vmem %s16_s10, 128  ;;  %p68_p4 = scmp.lt.s32.totalorder %s16_s10, %s16_s10 }
   0x9   :  { %p64_p3 = scmp.ne.s32.totalorder %s16_s10, %s63_s18  ;;  %p69_p5 = scmp.lt.s32.totalorder %s63_s18, %s63_s18 }
   0xb   :  { %p70_p6 = por %p69_p5, %p68_p4 }
   0xd   :  { %p71_p7 = pnand %p70_p6, %p64_p3 }
   0xf   :  { %74 = shalt.err (!%p71_p7)
}
  0x10   :  { %18 = dma.hbm_to_vmem [thread:$0]  %s145_s0, 128, %s16_s10, [#allocation3]  }
  0x11   :  { %97 = dma.done.wait [#allocation3], 128  }
  0x12   :  { %98 = vsyncadd [#allocation3], 4294967168  ;;  %s102_s21 = smov [#allocation5]   ;;  %v24_v0 = vld [vmem:[#allocation2] sm:$0xff]  ;;  %vm33_vm0 = vcmask 523264  }
  0x13   :  { %s41_s22 = sshll.u32 %s102_s21, 4  ;;  %v50_v1 = vld [vmem:[%s146_s1] ss:$0 sm:$0xff]  ;;  %s42_s22 = int_to_ptr.vmem [resolvable:$true] %s41_s22 }
  0x14   :  { %v32_v2 = vmul.f32 %v50_v1, %v24_v0  ;;  %s75_s25 = scalar_lea.vmem %s42_s22, 128  ;;  %p80_p9 = scmp.lt.s32.totalorder %s42_s22, %s42_s22 }
  0x15   :  { %p76_p8 = scmp.ne.s32.totalorder %s42_s22, %s75_s25  ;;  %p81_p10 = scmp.lt.s32.totalorder %s75_s25, %s75_s25 }
  0x16   :  { %34 = vst.msk [vmem:[#allocation5] sm:$0xff] %vm33_vm0, %v32_v2 }
  0x17   :  { %p82_p11 = por %p81_p10, %p80_p9 }
  0x19   :  { %p83_p12 = pnand %p82_p11, %p76_p8 }
  0x1b   :  { %86 = shalt.err (!%p83_p12)
}
  0x1c   :  { %s87_s27 = scalar_lea.hbm %s147_s2, 128 }
  0x1d   :  { %p88_p13 = scmp.ne.s32.totalorder %s147_s2, %s87_s27  ;;  %p91_p0 = scmp.lt.u32.totalorder %s87_s27, %s147_s2 }
  0x1f   :  { %p93_p1 = pnand %p91_p0, %p88_p13 }
  0x21   :  { %96 = shalt.err (!%p93_p1)
}
  0x22   :  { %44 = dma.vmem_to_hbm [thread:$0]  %s42_s22, 128, %s147_s2, [#allocation4]  }
  0x23   :  { %99 = dma.done.wait [#allocation4], 128  }
  0x24   :  { %100 = vsyncadd [#allocation4], 4294967168 }
  0x25   :  { %48 = vsyncpa [#allocation3], 1 }
  0x26   :  { %49 = vsyncpa [#allocation4], 1 }

</bundles_post_ra>
